<compile_context>
chip_gen: v7x
topology: tpu7x:2x2x1
jax: 0.10.0
libtpu: 0.0.40
codegen_flags: <defaults>
</compile_context>

<pallas_src>
import functools

import jax
import jax.numpy as jnp
from jax import lax
from jax.experimental import pallas as pl
from jax.experimental.pallas import tpu as pltpu


# ----------------------------- small helpers -----------------------------

def _round_up(x, m):
    return ((x + m - 1) // m) * m


def _vmem_limits():
    """(vmem_limit_bytes for CompilerParams, tiling budget in bytes)."""
    try:
        cap = int(pltpu.get_tpu_info().vmem_capacity_bytes)
    except Exception:
        cap = 64 * 1024 * 1024
    limit = int(min(cap * 3 // 4, 96 * 1024 * 1024))
    budget = int(limit * 3 // 4)
    return limit, budget


def _choose_m_tile(d, m, budget, w_bytes=2):
    """Largest intermediate-dim block whose double-buffered fused weight stream
    (gate+up+down = 3*tm*d) fits half the VMEM budget."""
    if 2 * 3 * m * d * w_bytes <= budget // 2:
        return m                      # full m, no blocking
    tm = (budget // 2) // (2 * 3 * d * w_bytes)
    tm = max(8, (tm // 8) * 8)
    return int(min(tm, m))


def _choose_t_tile(n, w_stream_bytes, per_row_bytes, budget, cap=1024):
    """Token tile (multiple of 8) that fits the VMEM left after the weights,
    plus the padded token count (multiple of the tile)."""
    remaining = max(budget - w_stream_bytes, 256 * 1024)
    tt = remaining // max(per_row_bytes, 1)
    tt = int(max(8, min((tt // 8) * 8, cap)))
    if tt >= n:
        tt = _round_up(max(n, 1), 8)
    n_pad = _round_up(max(n, 1), tt)
    return tt, n_pad


_DN_LAST = (((1,), (1,)), ((), ()))   # contract last axis of both (x @ W.T form)
_DN_STD = (((1,), (0,)), ((), ()))    # standard (M,K)@(K,N)


# ----------------------------- Pallas kernels -----------------------------

def _gate_kernel(x_ref, w_ref, scores_ref, *, n_experts):
    # x: (TT, d) f32, w: (E_pad, d) f32 zero-padded rows, scores: (TT, E_pad)
    logits = lax.dot_general(x_ref[...], w_ref[...], _DN_LAST,
                             preferred_element_type=jnp.float32)
    lane = lax.broadcasted_iota(jnp.int32, logits.shape, 1)
    logits = jnp.where(lane < n_experts, logits, -1e30)          # kill padded experts
    m = jnp.max(logits, axis=-1, keepdims=True)
    e = jnp.exp(logits - m)
    denom = jnp.sum(e, axis=-1, keepdims=True)
    # approx=False: keep softmax bit-stable so downstream top-k matches the reference
    scores_ref[...] = (e * pl.reciprocal(denom, approx=False)).astype(scores_ref.dtype)


def _expert_mlp_kernel(idx_ref, x_hbm, tw_ref, wgu_ref, wd_ref, o_ref,
                       x_vmem, sem, acc_ref, *, tt, t_pad):
    # grid = (E, T_pad//tt, Mt); Mt (intermediate dim) is the reduction axis.
    # idx_ref: SMEM (E*T_pad,) int32 token row indices (scalar prefetch)
    # x_hbm:   (N_pad, d) bf16 in HBM (gather source)
    # tw_ref:  (tt, 1) f32 expert-choice weights   wgu_ref: (2, tm, d) bf16
    # wd_ref:  (tm, d) bf16 (pre-transposed down proj)      o_ref: (tt, d)
    e = pl.program_id(0)
    t = pl.program_id(1)
    mi = pl.program_id(2)

    @pl.when(mi == 0)
    def _():
        # Gather this tile's tokens straight from HBM (no materialized (E,T,d)).
        # TODO(synk): prefetch the next tile's gather during compute (deeper overlap).
        base = e * t_pad + t * tt

        def _issue(r, c):
            row = idx_ref[base + r]
            pltpu.make_async_copy(x_hbm.at[pl.ds(row, 1)],
                                  x_vmem.at[pl.ds(r, 1)], sem.at[0]).start()
            return c
        lax.fori_loop(0, tt, _issue, 0)

        def _wait(r, c):
            row = idx_ref[base + r]
            pltpu.make_async_copy(x_hbm.at[pl.ds(row, 1)],
                                  x_vmem.at[pl.ds(r, 1)], sem.at[0]).wait()
            return c
        lax.fori_loop(0, tt, _wait, 0)

        acc_ref[...] = jnp.zeros_like(acc_ref)

    x = x_vmem[...]                                              # (tt, d) bf16
    g = lax.dot_general(x, wgu_ref[0], _DN_LAST, preferred_element_type=jnp.float32)
    u = lax.dot_general(x, wgu_ref[1], _DN_LAST, preferred_element_type=jnp.float32)
    h = (jax.nn.gelu(g, approximate=False) * u).astype(wd_ref.dtype)   # exact (erf) GELU
    acc_ref[...] += lax.dot_general(h, wd_ref[...], _DN_STD,
                                    preferred_element_type=jnp.float32)

    @pl.when(mi == pl.num_programs(2) - 1)
    def _():
        # expert-choice weight applied once at finalize (not per m-block)
        o_ref[...] = (acc_ref[...] * tw_ref[...]).astype(o_ref.dtype)


def _dense_mlp_kernel(x_ref, wgu_ref, wd_ref, o_ref, acc_ref):
    # grid = (N_pad//tt, Ms); shared-expert MLP, no gating weight stream at all.
    mi = pl.program_id(1)

    @pl.when(mi == 0)
    def _():
        acc_ref[...] = jnp.zeros_like(acc_ref)

    x = x_ref[...]                                               # (tt, d) bf16
    g = lax.dot_general(x, wgu_ref[0], _DN_LAST, preferred_element_type=jnp.float32)
    u = lax.dot_general(x, wgu_ref[1], _DN_LAST, preferred_element_type=jnp.float32)
    h = (jax.nn.gelu(g, approximate=False) * u).astype(wd_ref.dtype)
    acc_ref[...] += lax.dot_general(h, wd_ref[...], _DN_STD,
                                    preferred_element_type=jnp.float32)

    @pl.when(mi == pl.num_programs(1) - 1)
    def _():
        o_ref[...] = acc_ref[...].astype(o_ref.dtype)


# ----------------------------- pallas_call wrappers -----------------------------

def _gate_scores(flat_x_pad, gate_w_pad, n_experts, tt, vmem_limit):
    Np, d = flat_x_pad.shape
    E_pad = gate_w_pad.shape[0]
    return pl.pallas_call(
        functools.partial(_gate_kernel, n_experts=n_experts),
        out_shape=jax.ShapeDtypeStruct((Np, E_pad), jnp.float32),
        grid_spec=pltpu.PrefetchScalarGridSpec(
            num_scalar_prefetch=0,
            grid=(Np // tt,),
            in_specs=[pl.BlockSpec((tt, d), lambda i: (i, 0)),
                      pl.BlockSpec((E_pad, d), lambda i: (0, 0))],
            out_specs=pl.BlockSpec((tt, E_pad), lambda i: (i, 0)),
        ),
        compiler_params=pltpu.CompilerParams(
            dimension_semantics=("parallel",), vmem_limit_bytes=vmem_limit),
        cost_estimate=pl.CostEstimate(
            flops=2 * Np * d * E_pad, transcendentals=Np * E_pad,
            bytes_accessed=4 * (Np * d + E_pad * d + Np * E_pad)),
    )(flat_x_pad, gate_w_pad)


def _expert_mlp(idx_flat, x_hbm, tw, wgu, wd, *, tt, out_dtype, vmem_limit):
    E, Mt, _, tm, d = wgu.shape
    T_pad = tw.shape[1]
    m_pad = Mt * tm
    kernel = functools.partial(_expert_mlp_kernel, tt=tt, t_pad=T_pad)
    return pl.pallas_call(
        kernel,
        out_shape=jax.ShapeDtypeStruct((E, T_pad, d), out_dtype),
        grid_spec=pltpu.PrefetchScalarGridSpec(
            num_scalar_prefetch=1,                      # idx_flat -> SMEM
            grid=(E, T_pad // tt, Mt),
            in_specs=[
                pl.BlockSpec(memory_space=pl.ANY),                              # x in HBM
                pl.BlockSpec((None, tt, 1), lambda e, t, mi, idx: (e, t, 0)),   # tw
                pl.BlockSpec((None, None, 2, tm, d),
                             lambda e, t, mi, idx: (e, mi, 0, 0, 0)),           # fused gate/up
                pl.BlockSpec((None, None, tm, d),
                             lambda e, t, mi, idx: (e, mi, 0, 0)),              # down (m, d)
            ],
            out_specs=pl.BlockSpec((None, tt, d), lambda e, t, mi, idx: (e, t, 0)),
            scratch_shapes=[
                pltpu.VMEM((tt, d), x_hbm.dtype),       # gathered tokens
                pltpu.SemaphoreType.DMA((1,)),
                pltpu.VMEM((tt, d), jnp.float32),       # f32 accumulator
            ]),
        compiler_params=pltpu.CompilerParams(
            dimension_semantics=("parallel", "parallel", "arbitrary"),
            vmem_limit_bytes=vmem_limit),
        cost_estimate=pl.CostEstimate(
            flops=6 * E * T_pad * d * m_pad,
            transcendentals=E * T_pad * m_pad,
            bytes_accessed=2 * (2 * E * T_pad * d + 3 * E * m_pad * d) + 4 * E * T_pad),
    )(idx_flat, x_hbm, tw, wgu, wd)


def _dense_mlp(x_pad, wgu_sh, wd_sh, *, tt, out_dtype, vmem_limit):
    Ms, _, tms, d = wgu_sh.shape
    Np = x_pad.shape[0]
    si_pad = Ms * tms
    return pl.pallas_call(
        _dense_mlp_kernel,
        out_shape=jax.ShapeDtypeStruct((Np, d), out_dtype),
        grid_spec=pltpu.PrefetchScalarGridSpec(
            num_scalar_prefetch=0,
            grid=(Np // tt, Ms),
            in_specs=[
                pl.BlockSpec((tt, d), lambda t, mi: (t, 0)),
                pl.BlockSpec((None, 2, tms, d), lambda t, mi: (mi, 0, 0, 0)),
                pl.BlockSpec((None, tms, d), lambda t, mi: (mi, 0, 0)),
            ],
            out_specs=pl.BlockSpec((tt, d), lambda t, mi: (t, 0)),
            scratch_shapes=[pltpu.VMEM((tt, d), jnp.float32)]),
        compiler_params=pltpu.CompilerParams(
            dimension_semantics=("parallel", "arbitrary"),
            vmem_limit_bytes=vmem_limit),
        cost_estimate=pl.CostEstimate(
            flops=6 * Np * d * si_pad,
            transcendentals=Np * si_pad,
            bytes_accessed=2 * (2 * Np * d + 3 * si_pad * d)),
    )(x_pad, wgu_sh, wd_sh)


# ------------------------------ one-time param prep ------------------------------

def prepare_params(params, *, num_experts, f_c, compute_dtype=jnp.bfloat16):
    """Hoisted weight repacking: run once, reuse for every forward."""
    E = num_experts
    gate_w = params["gate_w"]                          # (E, d)
    d = gate_w.shape[1]
    m = params["gate_proj_w"].shape[1]
    si = params["shared_gate_w"].shape[0]
    vmem_limit, budget = _vmem_limits()

    # gate: lane-dense padded expert axis, stays f32 for top-k stability
    E_pad = _round_up(E, 128)
    gate_w_pad = jnp.pad(gate_w, ((0, E_pad - E), (0, 0))).astype(jnp.float32)

    # sparse experts: fused gate/up stream + pre-transposed down, m blocked & padded
    tm = _choose_m_tile(d, m, budget)
    m_pad = _round_up(m, tm)
    Mt = m_pad // tm
    gp = jnp.pad(params["gate_proj_w"], ((0, 0), (0, m_pad - m), (0, 0))).astype(compute_dtype)
    up = jnp.pad(params["up_proj_w"], ((0, 0), (0, m_pad - m), (0, 0))).astype(compute_dtype)
    wgu = jnp.stack([gp.reshape(E, Mt, tm, d), up.reshape(E, Mt, tm, d)], axis=2)   # (E,Mt,2,tm,d)
    dn = jnp.pad(params["down_proj_w"], ((0, 0), (0, 0), (0, m_pad - m)))           # (E, d, m_pad)
    wd = jnp.transpose(dn, (0, 2, 1)).reshape(E, Mt, tm, d).astype(compute_dtype)   # (E,Mt,tm,d)

    # shared expert
    tms = _choose_m_tile(d, si, budget)
    si_pad = _round_up(si, tms)
    Ms = si_pad // tms
    gs = jnp.pad(params["shared_gate_w"], ((0, si_pad - si), (0, 0))).astype(compute_dtype)
    us = jnp.pad(params["shared_up_w"], ((0, si_pad - si), (0, 0))).astype(compute_dtype)
    wgu_sh = jnp.stack([gs.reshape(Ms, tms, d), us.reshape(Ms, tms, d)], axis=1)    # (Ms,2,tms,d)
    ds_ = jnp.pad(params["shared_down_w"], ((0, 0), (0, si_pad - si)))              # (d, si_pad)
    wd_sh = jnp.transpose(ds_, (1, 0)).reshape(Ms, tms, d).astype(compute_dtype)    # (Ms,tms,d)

    return dict(num_experts=E, f_c=f_c, d=d, E_pad=E_pad, tm=tm, tms=tms,
                gate_w_pad=gate_w_pad, wgu=wgu, wd=wd, wgu_sh=wgu_sh, wd_sh=wd_sh,
                compute_dtype=compute_dtype, vmem_limit=vmem_limit, vmem_budget=budget)


# ------------------------------ block forward ------------------------------

def ec_sparse_moe_block(x, packed):
    """x: (B, S, d) float32 -> (B, S, d) float32 (matches PyTorch forward)."""
    B, S, d = x.shape
    E = packed["num_experts"]
    f_c = packed["f_c"]
    C = int(S * f_c / E)                 # expert capacity
    assert C > 0, "expert capacity is zero for this (S, f_c, E)"
    N = B * S
    T = B * C                            # tokens processed by each expert
    cdt = packed["compute_dtype"]
    budget = packed["vmem_budget"]
    vmem_limit = packed["vmem_limit"]
    tm, tms, E_pad = packed["tm"], packed["tms"], packed["E_pad"]

    # --- derive token tiles from the VMEM budget (no full-array fallback) ---
    dense_row = d * (2 * 2 + 2 * 2 + 4)                       # x(2buf) + out(2buf) + acc
    gate_row = 2 * 4 * d + 2 * 4 * E_pad
    w_dense = 2 * 3 * tms * d * 2
    w_gate = E_pad * d * 4
    tt_tok, N_pad = _choose_t_tile(N, max(w_dense, w_gate),
                                   max(dense_row, gate_row), budget, cap=2048)
    exp_row = d * (2 * 2 + 4 + 2) + 16                        # out(2buf) + acc + gather buf
    w_exp = 2 * 3 * tm * d * 2
    tt_e, T_pad = _choose_t_tile(T, w_exp, exp_row, budget, cap=1024)

    flat_x = x.reshape(N, d)
    if N_pad != N:
        flat_x = jnp.pad(flat_x, ((0, N_pad - N), (0, 0)))
    flat_x_cd = flat_x.astype(cdt)                            # bf16 MXU feed / gather source

    # ---- gating (f32 matmul + lane-dense masked softmax) in Pallas ----
    scores = _gate_scores(flat_x.astype(jnp.float32), packed["gate_w_pad"],
                          E, tt_tok, vmem_limit)[:N, :E]

    scores_bes = jnp.transpose(scores.reshape(B, S, E), (0, 2, 1))      # (B, E, S)
    # TODO(synk): torch.topk has no clean Pallas TPU primitive; jax.lax.top_k glue.
    topk_w, topk_idx = jax.lax.top_k(scores_bes, C)                     # (B, E, C)

    flat_idx = topk_idx + (jnp.arange(B, dtype=topk_idx.dtype) * S)[:, None, None]
    idx_e = jnp.transpose(flat_idx, (1, 0, 2)).reshape(E, T)            # (E, B*C)
    w_e = jnp.transpose(topk_w, (1, 0, 2)).reshape(E, T).astype(jnp.float32)

    # pad T with zero-weight slots (index 0, weight 0 -> contributes nothing)
    if T_pad != T:
        idx_e = jnp.concatenate([idx_e, jnp.zeros((E, T_pad - T), idx_e.dtype)], axis=1)
        w_e = jnp.concatenate([w_e, jnp.zeros((E, T_pad - T), w_e.dtype)], axis=1)
    idx_flat = idx_e.reshape(-1).astype(jnp.int32)
    tw = w_e.reshape(E, T_pad, 1)

    # ---- per-expert MoeMLP with in-kernel HBM row gather ----
    expert_out = _expert_mlp(idx_flat, flat_x_cd, tw, packed["wgu"], packed["wd"],
                             tt=tt_e, out_dtype=cdt, vmem_limit=vmem_limit)   # (E,T_pad,d)

    # TODO(synk): scatter-add (torch index_add_) kept as XLA glue; could be fused into
    # the expert kernel with an index-driven output DMA scatter.
    flat_out = jnp.zeros((N, d), jnp.float32)
    flat_out = flat_out.at[idx_e.reshape(-1)].add(
        expert_out.reshape(E * T_pad, d).astype(jnp.float32))

    # ---- shared experts (dense MoeMLP on all tokens), no tw stream ----
    shared = _dense_mlp(flat_x_cd, packed["wgu_sh"], packed["wd_sh"],
                        tt=tt_tok, out_dtype=cdt, vmem_limit=vmem_limit)[:N]

    return (flat_out + shared.astype(jnp.float32)).astype(x.dtype).reshape(B, S, d)


# ----------------------------- plain-JAX reference -----------------------------

def _reference(x, params, *, num_experts, f_c):
    B, S, d = x.shape
    E = num_experts
    C = int(S * f_c / E)
    hp = jax.lax.Precision.HIGHEST
    flat_x = x.reshape(B * S, d)

    logits = jnp.dot(flat_x, params["gate_w"].T, precision=hp)
    scores = jax.nn.softmax(logits, axis=-1).reshape(B, S, E)
    scores = jnp.transpose(scores, (0, 2, 1))
    topk_w, topk_idx = jax.lax.top_k(scores, C)
    topk_w = topk_w.astype(x.dtype)
    flat_idx = topk_idx + (jnp.arange(B) * S)[:, None, None]

    def mlp(t, wg, wu, wd):
        g = jnp.dot(t, wg.T, precision=hp)
        u = jnp.dot(t, wu.T, precision=hp)
        return jnp.dot(jax.nn.gelu(g, approximate=False) * u, wd.T, precision=hp)

    flat_out = jnp.zeros((B * S, d), x.dtype)
    for e in range(E):
        idx = flat_idx[:, e, :].reshape(-1)
        w = topk_w[:, e, :].reshape(-1, 1)
        t = flat_x[idx]
        o = mlp(t, params["gate_proj_w"][e], params["up_proj_w"][e],
                params["down_proj_w"][e]) * w
        flat_out = flat_out.at[idx].add(o)
    out = flat_out.reshape(B, S, d)
    out = out + mlp(flat_x, params["shared_gate_w"], params["shared_up_w"],
                    params["shared_down_w"]).reshape(B, S, d)
    return out


# ----------------------------------- main -----------------------------------

if __name__ == "__main__":
    B, S, d = 2, 16, 32
    E, f_c = 16, 2.0
    mlp_dim = 4
    n_shared = 2
    shared_inter = d * n_shared

    key = jax.random.PRNGKey(0)
    ks = jax.random.split(key, 8)
    sc = 0.1
    params = {
        "gate_w":        jax.random.normal(ks[0], (E, d),              jnp.float32) * sc,
        "gate_proj_w":   jax.random.normal(ks[1], (E, mlp_dim, d),     jnp.float32) * sc,
        "up_proj_w":     jax.random.normal(ks[2], (E, mlp_dim, d),     jnp.float32) * sc,
        "down_proj_w":   jax.random.normal(ks[3], (E, d, mlp_dim),     jnp.float32) * sc,
        "shared_gate_w": jax.random.normal(ks[4], (shared_inter, d),   jnp.float32) * sc,
        "shared_up_w":   jax.random.normal(ks[5], (shared_inter, d),   jnp.float32) * sc,
        "shared_down_w": jax.random.normal(ks[6], (d, shared_inter),   jnp.float32) * sc,
    }
    x = jax.random.normal(ks[7], (B, S, d), jnp.float32)

    packed = prepare_params(params, num_experts=E, f_c=f_c)   # one-time weight prep
    out = ec_sparse_moe_block(x, packed)
    out = jax.block_until_ready(out)

    ref = jax.block_until_ready(_reference(x, params, num_experts=E, f_c=f_c))
    assert out.shape == (B, S, d)
    assert jnp.allclose(out, ref, rtol=1e-2, atol=1e-2), "Pallas output mismatch vs reference"

    print("KERNEL_OK")
</pallas_src>

<mosaic_0001>
module attributes {stable_mosaic.version = 11 : i64} {
  func.func @_gate_kernel(%arg0: i32, %arg1: memref<32x32xf32, #tpu.memory_space<vmem>>, %arg2: memref<128x32xf32, #tpu.memory_space<vmem>>, %arg3: memref<32x128xf32, #tpu.memory_space<vmem>>) attributes {dimension_semantics = [#tpu.dimension_semantics<parallel>], iteration_bounds = array<i64: 1>, scalar_prefetch = 0 : i64, scratch_operands = 0 : i64, tpu.core_type = #tpu.core_type<tc>, window_params = [{transform_indices = @transform_0, window_bounds = array<i64: 32, 32>}, {pipeline_mode = #tpu.pipeline_mode<synchronous>, transform_indices = @transform_1, window_bounds = array<i64: 128, 32>}, {transform_indices = @transform_2, window_bounds = array<i64: 32, 128>}]} {
    %c0 = arith.constant 0 : index
    %c0_0 = arith.constant 0 : index
    %0 = vector.load %arg1[%c0, %c0_0] : memref<32x32xf32, #tpu.memory_space<vmem>>, vector<32x32xf32>
    %c0_1 = arith.constant 0 : index
    %c0_2 = arith.constant 0 : index
    %1 = vector.load %arg2[%c0_1, %c0_2] : memref<128x32xf32, #tpu.memory_space<vmem>>, vector<128x32xf32>
    %cst = arith.constant dense<0.000000e+00> : vector<32x128xf32>
    %2 = tpu.matmul %0, %1, %cst {dimension_numbers = #tpu.dot_dimension_numbers<[1], [1], [0], [0], [0, 0, 1, 0], [], []>} : vector<32x32xf32>, vector<128x32xf32>, vector<32x128xf32> -> vector<32x128xf32>
    %3 = tpu.iota {dimensions = array<i32: 1>} : vector<32x128xi32>
    %c16_i32 = arith.constant 16 : i32
    %4 = vector.broadcast %c16_i32 : i32 to vector<32x128xi32>
    %5 = arith.cmpi slt, %3, %4 : vector<32x128xi32>
    %cst_3 = arith.constant -1.000000e+30 : f32
    %6 = vector.broadcast %cst_3 : f32 to vector<32x128xf32>
    %7 = arith.select %5, %2, %6 : vector<32x128xi1>, vector<32x128xf32>
    %cst_4 = arith.constant dense<0xFF800000> : vector<32xf32>
    %8 = vector.multi_reduction <maximumf>, %7, %cst_4 [1] : vector<32x128xf32> to vector<32xf32>
    %9 = vector.shape_cast %8 : vector<32xf32> to vector<32x1xf32>
    %10 = vector.broadcast %9 : vector<32x1xf32> to vector<32x128xf32>
    %11 = arith.subf %7, %10 : vector<32x128xf32>
    %12 = math.exp %11 : vector<32x128xf32>
    %cst_5 = arith.constant dense<0.000000e+00> : vector<32xf32>
    %13 = vector.multi_reduction <add>, %12, %cst_5 [1] : vector<32x128xf32> to vector<32xf32>
    %14 = vector.shape_cast %13 : vector<32xf32> to vector<32x1xf32>
    %15 = tpu.reciprocal %14 : vector<32x1xf32> -> vector<32x1xf32>
    %16 = vector.broadcast %15 : vector<32x1xf32> to vector<32x128xf32>
    %17 = arith.mulf %12, %16 : vector<32x128xf32>
    %c0_6 = arith.constant 0 : index
    %c0_7 = arith.constant 0 : index
    %18 = vector.load %arg3[%c0_6, %c0_7] : memref<32x128xf32, #tpu.memory_space<vmem>>, vector<32x128xf32>
    tpu.vector_store %arg3[%c0_6, %c0_7], %17 {strides = array<i32>} : memref<32x128xf32, #tpu.memory_space<vmem>>, vector<32x128xf32>,
    return
  }
  func.func @transform_0(%arg0: i32) -> (i32, i32) {
    %c0_i32 = arith.constant 0 : i32
    %c0_i32_0 = arith.constant 0 : i32
    return %arg0, %c0_i32 : i32, i32
  }
  func.func @transform_1(%arg0: i32) -> (i32, i32) {
    %c0_i32 = arith.constant 0 : i32
    %c0_i32_0 = arith.constant 0 : i32
    %c0_i32_1 = arith.constant 0 : i32
    return %c0_i32, %c0_i32_0 : i32, i32
  }
  func.func @transform_2(%arg0: i32) -> (i32, i32) {
    %c0_i32 = arith.constant 0 : i32
    %c0_i32_0 = arith.constant 0 : i32
    return %arg0, %c0_i32 : i32, i32
  }
}

</mosaic_0001>

<bundles_post_ra>
// kernel: tpu_custom_call.1
= control target key start
LH: loop header
LB: loop body
LE: loop exit
PB: predicated region body
PF: predicated region fallthrough
CT: control target
= control target key end

     0   :  { %vm32_vm0 = vcmask 261120   ;;  %s590_s0 = inlined_call_operand.vmem [shape: f32[32,32], index: 0, kind: input, shape index: {}]   ;;  %s591_s1 = inlined_call_operand.vmem [shape: f32[128,32], index: 1, kind: input, shape index: {}]   ;;  %s592_s2 = inlined_call_operand.hbm [shape: f32[32,128], index: 2, kind: output, shape index: {}]  }
   0x1   :  { %v16_v0 = vld [vmem:[%s591_s1] sm:$0xff]  ;;  %v17_v1 = vld [vmem:[%s591_s1 + $0x8] sm:$0xff]  ;;  %v18_v2 = vld [vmem:[%s591_s1 + $0x10] sm:$0xff] }
   0x2   :  { %v319_v3 = vpack.c.bf16 %v17_v1, %v16_v0  ;;  %vm455_vm1 = vmpackc.low %vm32_vm0, %vm32_vm0  ;;  %v19_v5 = vld [vmem:[%s591_s1 + $0x18] sm:$0xff]  ;;  %v12_v7 = vld [vmem:[%s590_s0] sm:$0xff] }
   0x3   :  { %v325_v6 = vpack.c.bf16 %v19_v5, %v18_v2  ;;  %v20_v8 = vld [vmem:[%s591_s1 + $0x20] sm:$0xff]  ;;  %v21_v9 = vld [vmem:[%s591_s1 + $0x28] sm:$0xff]  ;;  %313 = vmatprep.mubr.msk.f32.mxu0 %vm32_vm0, %v12_v7  ;;  %v14_v10 = vld [vmem:[%s590_s0 + $0x10] sm:$0xff] }
   0x4   :  { %321 = vmatprep.subr.msk.bf16.mxu0 %vm455_vm1, %v319_v3  ;;  %367 = vmatprep.subr.msk.bf16.mxu1 %vm455_vm1, %v319_v3 }
   0x5   :  { %324 = vmatpush3.bf16.xpose.msk.msra.mxu0 %vm455_vm1, %v319_v3  ;;  %375 = vmatpush3.bf16.xpose.msk.msra.mxu1 %vm455_vm1, %v319_v3 }
   0x6   :  { %327 = vmatprep.subr.msk.bf16.mxu0 %vm455_vm1, %v325_v6  ;;  %368 = vmatprep.subr.msk.bf16.mxu1 %vm455_vm1, %v325_v6 }
   0x7   :  { %316 = vmatprep.mubr.msk.f32.mxu1 %vm32_vm0, %v14_v10 }
   0x8   :  { %7 = vsyncpa [#allocation3], 0  ;;  %v331_v11 = vpack.c.bf16 %v21_v9, %v20_v8  ;;  %v22_v12 = vld [vmem:[%s591_s1 + $0x30] sm:$0xff]  ;;  %v23_v13 = vld [vmem:[%s591_s1 + $0x38] sm:$0xff]  ;;  %v178_v29 = vlaneseq }
   0x9   :  { %v337_v14 = vpack.c.bf16 %v23_v13, %v22_v12  ;;  %v24_v15 = vld [vmem:[%s591_s1 + $0x40] sm:$0xff]  ;;  %v25_v16 = vld [vmem:[%s591_s1 + $0x48] sm:$0xff]  ;;  %v26_v18 = vld [vmem:[%s591_s1 + $0x50] sm:$0xff] }
   0xa   :  { %v343_v17 = vpack.c.bf16 %v25_v16, %v24_v15  ;;  %v27_v19 = vld [vmem:[%s591_s1 + $0x58] sm:$0xff]  ;;  %v28_v21 = vld [vmem:[%s591_s1 + $0x60] sm:$0xff]  ;;  %v29_v22 = vld [vmem:[%s591_s1 + $0x68] sm:$0xff]  ;;  %v179_v30 = vand.u32 127, %v178_v29 }
   0xb   :  { %v349_v20 = vpack.c.bf16 %v27_v19, %v26_v18  ;;  %v355_v23 = vpack.c.bf16 %v29_v22, %v28_v21  ;;  %v30_v24 = vld [vmem:[%s591_s1 + $0x70] sm:$0xff]  ;;  %v31_v25 = vld [vmem:[%s591_s1 + $0x78] sm:$0xff]  ;;  %v13_v27 = vld [vmem:[%s590_s0 + $0x8] sm:$0xff] }
   0xc   :  { %v361_v26 = vpack.c.bf16 %v31_v25, %v30_v24  ;;  %v15_v28 = vld [vmem:[%s590_s0 + $0x18] sm:$0xff]  ;;  %vm180_vm2 = vcmp.lt.s32.totalorder %v179_v30, 16  ;;  %s426_s0 = smov [#allocation2]  }
   0xd   :  { %330 = vmatpush3.bf16.xpose.msk.msra.mxu0 %vm455_vm1, %v325_v6  ;;  %376 = vmatpush3.bf16.xpose.msk.msra.mxu1 %vm455_vm1, %v325_v6  ;;  %s230_s20 = sshll.u32 %s426_s0, 4  ;;  %s231_s20 = int_to_ptr.vmem [resolvable:$true] %s230_s20 }
   0xe   :  { %333 = vmatprep.subr.msk.bf16.mxu0 %vm455_vm1, %v331_v11  ;;  %369 = vmatprep.subr.msk.bf16.mxu1 %vm455_vm1, %v331_v11  ;;  %s402_s21 = scalar_lea.vmem %s231_s20, 512  ;;  %p407_p1 = scmp.lt.s32.totalorder %s231_s20, %s231_s20 }
   0xf   :  { %p403_p0 = scmp.ne.s32.totalorder %s231_s20, %s402_s21  ;;  %p408_p2 = scmp.lt.s32.totalorder %s402_s21, %s402_s21 }
  0x11   :  { %p409_p3 = por %p408_p2, %p407_p1 }
  0x13   :  { %p410_p4 = pnand %p409_p3, %p403_p0 }
  0x15   :  { %336 = vmatpush3.bf16.xpose.msk.msra.mxu0 %vm455_vm1, %v331_v11  ;;  %377 = vmatpush3.bf16.xpose.msk.msra.mxu1 %vm455_vm1, %v331_v11 }
  0x16   :  { %339 = vmatprep.subr.msk.bf16.mxu0 %vm455_vm1, %v337_v14  ;;  %370 = vmatprep.subr.msk.bf16.mxu1 %vm455_vm1, %v337_v14 }
  0x1d   :  { %342 = vmatpush3.bf16.xpose.msk.msra.mxu0 %vm455_vm1, %v337_v14  ;;  %378 = vmatpush3.bf16.xpose.msk.msra.mxu1 %vm455_vm1, %v337_v14 }
  0x1e   :  { %345 = vmatprep.subr.msk.bf16.mxu0 %vm455_vm1, %v343_v17  ;;  %371 = vmatprep.subr.msk.bf16.mxu1 %vm455_vm1, %v343_v17 }
  0x25   :  { %348 = vmatpush3.bf16.xpose.msk.msra.mxu0 %vm455_vm1, %v343_v17  ;;  %379 = vmatpush3.bf16.xpose.msk.msra.mxu1 %vm455_vm1, %v343_v17 }
  0x26   :  { %351 = vmatprep.subr.msk.bf16.mxu0 %vm455_vm1, %v349_v20  ;;  %372 = vmatprep.subr.msk.bf16.mxu1 %vm455_vm1, %v349_v20 }
  0x2d   :  { %354 = vmatpush3.bf16.xpose.msk.msra.mxu0 %vm455_vm1, %v349_v20  ;;  %380 = vmatpush3.bf16.xpose.msk.msra.mxu1 %vm455_vm1, %v349_v20 }
  0x2e   :  { %357 = vmatprep.subr.msk.bf16.mxu0 %vm455_vm1, %v355_v23  ;;  %373 = vmatprep.subr.msk.bf16.mxu1 %vm455_vm1, %v355_v23 }
  0x35   :  { %360 = vmatpush3.bf16.xpose.msk.msra.mxu0 %vm455_vm1, %v355_v23  ;;  %381 = vmatpush3.bf16.xpose.msk.msra.mxu1 %vm455_vm1, %v355_v23 }
  0x36   :  { %363 = vmatprep.subr.msk.bf16.mxu0 %vm455_vm1, %v361_v26  ;;  %374 = vmatprep.subr.msk.bf16.mxu1 %vm455_vm1, %v361_v26 }
  0x3d   :  { %366 = vmatpush3.bf16.xpose.msk.msra.mxu0 %vm455_vm1, %v361_v26  ;;  %382 = vmatpush3.bf16.xpose.msk.msra.mxu1 %vm455_vm1, %v361_v26 }
  0x44   :  { %314 = vmatmul.mubr.msk.f32.vlgmr.msra.gmra.mrb[0].mxu0 %vm32_vm0, %v13_v27  ;;  %317 = vmatmul.mubr.msk.f32.vlgmr.msra.gmra.mrb[0].mxu1 %vm32_vm0, %v15_v28 }
 0x117   :  { %v315_v31 = vpop.f32.mrb[0].mxu0  ;;  %v318_v32 = vpop.f32.mrb[0].mxu1 }
 0x118   :  { %v159_v33 = vpop.f32.mrb[1].mxu0  ;;  %v169_v34 = vpop.f32.mrb[1].mxu1  ;;  %v184_v37 = vsel %vm180_vm2, %v318_v32, -1e+30  ;;  %v182_v38 = vsel %vm180_vm2, %v315_v31, -1e+30 }
 0x119   :  { %v183_v35 = vsel %vm180_vm2, %v169_v34, -1e+30  ;;  %v181_v36 = vsel %vm180_vm2, %v159_v33, -1e+30 }
 0x11a   :  { %189 = vmax.xlane.f32.xlu1 %v183_v35  ;;  %185 = vmax.xlane.f32.xlu0 %v181_v36 }
 0x11e   :  { %191 = vmax.xlane.f32.xlu1 %v184_v37  ;;  %187 = vmax.xlane.f32.xlu0 %v182_v38 }
 0x1a7   :  { %v190_v39 = vpop.xlane.xlu1 %189  ;;  %v186_v40 = vpop.xlane.xlu0 %185 }
 0x1a8   :  { %v195_v41 = vsub.f32 %v183_v35, %v190_v39  ;;  %v193_v42 = vsub.f32 %v181_v36, %v186_v40 }
 0x1aa   :  { %v197_v43 = vmul.f32 1.442695, %v193_v42  ;;  %v201_v46 = vmul.f32 1.442695, %v195_v41 }
 0x1ab   :  { %v192_v44 = vpop.xlane.xlu1 %191  ;;  %v188_v45 = vpop.xlane.xlu0 %187 }
 0x1ac   :  { %v194_v47 = vsub.f32 %v182_v38, %v188_v45  ;;  %386 = vpow2.f32 %v197_v43  ;;  %v196_v48 = vsub.f32 %v184_v37, %v192_v44 }
 0x1ad   :  { %388 = vpow2.f32 %v201_v46 }
 0x1ae   :  { %v199_v49 = vmul.f32 1.442695, %v194_v47  ;;  %v203_v50 = vmul.f32 1.442695, %v196_v48 }
 0x1b0   :  { %390 = vpow2.f32 %v199_v49 }
 0x1b1   :  { %392 = vpow2.f32 %v203_v50 }
 0x1b6   :  { %v387_v51 = vpop.eup %386 }
 0x1b7   :  { %205 = vadd.xlane.f32.xlu0 %v387_v51  ;;  %v389_v52 = vpop.eup %388 }
 0x1ba   :  { %v391_v53 = vpop.eup %390 }
 0x1bb   :  { %209 = vadd.xlane.f32.xlu0 %v389_v52  ;;  %207 = vadd.xlane.f32.xlu1 %v391_v53  ;;  %v393_v54 = vpop.eup %392 }
 0x1bf   :  { %211 = vadd.xlane.f32.xlu1 %v393_v54 }
 0x244   :  { %v206_v55 = vpop.xlane.xlu0 %205 }
 0x245   :  { %394 = vrcp.f32 %v206_v55 }
 0x248   :  { %v208_v56 = vpop.xlane.xlu1 %207  ;;  %v210_v57 = vpop.xlane.xlu0 %209 }
 0x249   :  { %396 = vrcp.f32 %v208_v56 }
 0x24a   :  { %398 = vrcp.f32 %v210_v57 }
 0x24c   :  { %v212_v58 = vpop.xlane.xlu1 %211 }
 0x24d   :  { %400 = vrcp.f32 %v212_v58 }
 0x24f   :  { %v395_v59 = vpop.eup %394 }
 0x250   :  { %v217_v60 = vmul.f32 %v395_v59, %v387_v51 }
 0x252   :  { %221 = vst [vmem:[#allocation2] sm:$0xff] %v217_v60 }
 0x253   :  { %v397_v61 = vpop.eup %396 }
 0x254   :  { %v399_v62 = vpop.eup %398  ;;  %v218_v63 = vmul.f32 %v397_v61, %v391_v53 }
 0x255   :  { %v219_v0 = vmul.f32 %v399_v62, %v389_v52 }
 0x256   :  { %222 = vst [vmem:[#allocation2 + $0x8] sm:$0xff] %v218_v63 }
 0x257   :  { %v401_v1 = vpop.eup %400  ;;  %223 = vst [vmem:[#allocation2 + $0x10] sm:$0xff] %v219_v0 }
 0x258   :  { %v220_v2 = vmul.f32 %v401_v1, %v393_v54 }
 0x25a   :  { %224 = vst [vmem:[#allocation2 + $0x18] sm:$0xff] %v220_v2 }
 0x25b   :  { %413 = shalt.err (!%p410_p4)
}
 0x25c   :  { %s414_s24 = scalar_lea.hbm %s592_s2, 512 }
 0x25d   :  { %p415_p5 = scmp.ne.s32.totalorder %s592_s2, %s414_s24  ;;  %p418_p6 = scmp.lt.u32.totalorder %s414_s24, %s592_s2 }
 0x25f   :  { %p420_p7 = pnand %p418_p6, %p415_p5 }
 0x261   :  { %423 = shalt.err (!%p420_p7)
}
 0x262   :  { %s427_s29 = smov 128   ;;  %s428_s30 = smov 8  }
 0x263   :  { %236 = dma.vmem_to_hbm [thread:$0]  %s231_s20, 512, %s592_s2, [#allocation3], %s427_s29, %s427_s29, %s428_s30  }
 0x264   :  { %424 = dma.done.wait [#allocation3], 512  }
 0x265   :  { %425 = vsyncadd [#allocation3], 4294966784 }
 0x266   :  { %240 = vsyncpa [#allocation3], 1 }

</bundles_post_ra>
